<compile_context>
chip_gen: v5e
topology: v5e:2x2
jax: 0.10.0
libtpu: 0.0.40
codegen_flags: <defaults>
</compile_context>

<pallas_src>
import math

import jax
import jax.numpy as jnp
from jax.experimental import pallas as pl
from jax.experimental.pallas import tpu as pltpu


def _mask_token_kernel(emb_ref, mask_ref, token_ref, out_ref):
    """One grid step = TB batch rows.

    emb_ref   : (TB, fs, hidden)  VMEM
    mask_ref  : (TB, fs, 1)       VMEM  (fs on sublanes -> lane-splat bcast)
    token_ref : (fs, hidden)      VMEM  (mask_emb + header_emb, grid-constant)
    out_ref   : (TB, fs, hidden)  VMEM
    """
    emb = emb_ref[...]                                        # (TB, fs, H)
    m = mask_ref[...]                                         # (TB, fs, 1)
    token = token_ref[...]                                    # (fs, H)

    # where(mask != 0, token * mask, emb)  == zero-then-add-token*mask
    masked_val = token[None, :, :] * m.astype(emb.dtype)      # (TB, fs, H)
    out_ref[...] = jnp.where(m != 0, masked_val, emb).astype(out_ref.dtype)


def _pick_target_bytes():
    """~2 MiB output tiles saturate HBM on v5e/v6e; v7x (3.2 TB/s HBM, 64 MiB
    VMEM per TC) wants larger tiles to amortize per-grid-step overhead."""
    try:
        vmem = pltpu.get_tpu_info().vmem_capacity_bytes
        if vmem is not None and vmem <= 64 * 1024 * 1024:     # v7x TensorCore
            return 6 * 1024 * 1024
    except Exception:
        pass
    return 2 * 1024 * 1024


def _pick_batch_tile(batch, fs, hidden, itemsize, target_bytes):
    """Choose the batch tile TB so one output tile is ~target_bytes."""
    row_bytes = max(fs * hidden * itemsize, 1)
    tb = max(1, target_bytes // row_bytes)
    # >= 2 grid steps per TensorCore (v7x has 2 TCs; the batch axis is
    # "parallel") so BlockSpec pipelining hides first fetch / last writeback.
    tb = min(tb, max(1, pl.cdiv(batch, 4)))
    return int(min(tb, batch))


def cm2_mask_token(embedding, masked_indices, header_emb, mask_emb):
    """Pallas implementation of CM2MaskToken.forward (functional; the PyTorch
    in-place update is expressed via input_output_aliases on `embedding`)."""
    batch, fs, hidden = embedding.shape
    assert masked_indices.shape == (batch, fs)
    assert header_emb.shape == (fs, hidden)
    assert mask_emb.shape == (hidden,)

    # Grid-invariant token table, precombined once (tiny: fs*hidden elems).
    token = (header_emb.astype(jnp.float32)
             + mask_emb.astype(jnp.float32)[None, :]).astype(embedding.dtype)
    # (batch, fs, 1): keeps fs on sublanes in the VMEM block so the in-kernel
    # broadcast over hidden is a lane splat (no XLU relayout).
    mask3 = masked_indices.reshape(batch, fs, 1)

    itemsize = embedding.dtype.itemsize
    tb = _pick_batch_tile(batch, fs, hidden, itemsize, _pick_target_bytes())
    grid = (pl.cdiv(batch, tb),)

    # Double-buffered VMEM budget; only raise the scoped limit when it would
    # not fit the smallest default (~16 MiB on v5e, ~32 MiB on v6e/v7x).
    tile_bytes = tb * fs * hidden * itemsize
    small_bytes = tb * fs * mask3.dtype.itemsize + fs * hidden * itemsize
    vmem_budget = 4 * tile_bytes + 2 * small_bytes
    compiler_kwargs = dict(dimension_semantics=("parallel",))
    if vmem_budget > 14 * 1024 * 1024:
        compiler_kwargs["vmem_limit_bytes"] = int(
            min(vmem_budget + 8 * 1024 * 1024, 48 * 1024 * 1024))

    # NOTE: hidden % 128 == 0 keeps output stores lane-dense (unmasked vst);
    # other widths are still correct but use masked stores.
    return pl.pallas_call(
        _mask_token_kernel,
        out_shape=jax.ShapeDtypeStruct((batch, fs, hidden), embedding.dtype),
        grid=grid,
        in_specs=[
            pl.BlockSpec((tb, fs, hidden), lambda b: (b, 0, 0)),  # embedding
            pl.BlockSpec((tb, fs, 1), lambda b: (b, 0, 0)),       # mask
            pl.BlockSpec((fs, hidden), lambda b: (0, 0)),         # token table
        ],
        out_specs=pl.BlockSpec((tb, fs, hidden), lambda b: (b, 0, 0)),
        # Mirror the PyTorch in-place update: callers may donate `embedding`.
        input_output_aliases={0: 0},
        compiler_params=pltpu.CompilerParams(**compiler_kwargs),
    )(embedding, mask3, token)


def _reference(embedding, masked_indices, header_emb, mask_emb):
    """Pure-JAX reference mirroring the PyTorch forward."""
    m = masked_indices.astype(jnp.float32)
    emb = jnp.where((m != 0)[:, :, None], 0.0, embedding.astype(jnp.float32))
    token = mask_emb[None, None, :] + header_emb[None, :, :]
    return (emb + token * m[:, :, None]).astype(embedding.dtype)


if __name__ == "__main__":
    batch, fs, hidden = 16, 8, 128  # hidden = 128 -> lane-dense stores

    key = jax.random.PRNGKey(0)
    k_emb, k_mask, k_head, k_tok = jax.random.split(key, 4)

    embedding = jax.random.normal(k_emb, (batch, fs, hidden), dtype=jnp.float32)
    masked_indices = jax.random.bernoulli(k_mask, 0.3, (batch, fs)).astype(
        jnp.float32
    )
    header_emb = jax.random.normal(k_head, (fs, hidden), dtype=jnp.float32)
    bound = 1.0 / math.sqrt(hidden)
    mask_emb = jax.random.uniform(
        k_tok, (hidden,), minval=-bound, maxval=bound, dtype=jnp.float32
    )

    # Reference first (kernel aliases its output onto `embedding`).
    ref = _reference(embedding, masked_indices, header_emb, mask_emb)

    out = cm2_mask_token(embedding, masked_indices, header_emb, mask_emb)
    out = jax.block_until_ready(out)

    assert out.shape == (batch, fs, hidden)
    assert jnp.allclose(out, ref, atol=1e-6, rtol=1e-6), "mismatch vs reference"

    print("KERNEL_OK")
</pallas_src>

<mosaic_0001>
module attributes {stable_mosaic.version = 11 : i64} {
  func.func @_mask_token_kernel(%arg0: i32, %arg1: memref<4x8x128xf32, #tpu.memory_space<vmem>>, %arg2: memref<4x8x1xf32, #tpu.memory_space<vmem>>, %arg3: memref<8x128xf32, #tpu.memory_space<vmem>>, %arg4: memref<4x8x128xf32, #tpu.memory_space<vmem>>) attributes {dimension_semantics = [#tpu.dimension_semantics<parallel>], iteration_bounds = array<i64: 4>, scalar_prefetch = 0 : i64, scratch_operands = 0 : i64, tpu.core_type = #tpu.core_type<tc>, window_params = [{transform_indices = @transform_0, window_bounds = array<i64: 4, 8, 128>}, {transform_indices = @transform_1, window_bounds = array<i64: 4, 8, 1>}, {pipeline_mode = #tpu.pipeline_mode<synchronous>, transform_indices = @transform_2, window_bounds = array<i64: 8, 128>}, {transform_indices = @transform_3, window_bounds = array<i64: 4, 8, 128>}]} {
    %c0 = arith.constant 0 : index
    %c0_0 = arith.constant 0 : index
    %c0_1 = arith.constant 0 : index
    %0 = vector.load %arg1[%c0, %c0_0, %c0_1] : memref<4x8x128xf32, #tpu.memory_space<vmem>>, vector<4x8x128xf32>
    %c0_2 = arith.constant 0 : index
    %c0_3 = arith.constant 0 : index
    %c0_4 = arith.constant 0 : index
    %1 = vector.load %arg2[%c0_2, %c0_3, %c0_4] : memref<4x8x1xf32, #tpu.memory_space<vmem>>, vector<4x8x1xf32>
    %c0_5 = arith.constant 0 : index
    %c0_6 = arith.constant 0 : index
    %2 = vector.load %arg3[%c0_5, %c0_6] : memref<8x128xf32, #tpu.memory_space<vmem>>, vector<8x128xf32>
    %3 = vector.shape_cast %2 : vector<8x128xf32> to vector<1x8x128xf32>
    %4 = vector.broadcast %3 : vector<1x8x128xf32> to vector<4x8x128xf32>
    %5 = vector.broadcast %1 : vector<4x8x1xf32> to vector<4x8x128xf32>
    %6 = arith.mulf %4, %5 : vector<4x8x128xf32>
    %cst = arith.constant 0.000000e+00 : f32
    %7 = vector.broadcast %cst : f32 to vector<4x8x1xf32>
    %8 = arith.cmpf one, %1, %7 : vector<4x8x1xf32>
    %9 = vector.shape_cast %8 : vector<4x8x1xi1> to vector<4x8x1xi1>
    %10 = vector.broadcast %9 : vector<4x8x1xi1> to vector<4x8x128xi1>
    %11 = arith.select %10, %6, %0 : vector<4x8x128xi1>, vector<4x8x128xf32>
    %c0_7 = arith.constant 0 : index
    %c0_8 = arith.constant 0 : index
    %c0_9 = arith.constant 0 : index
    %12 = vector.load %arg4[%c0_7, %c0_8, %c0_9] : memref<4x8x128xf32, #tpu.memory_space<vmem>>, vector<4x8x128xf32>
    tpu.vector_store %arg4[%c0_7, %c0_8, %c0_9], %11 {strides = array<i32>} : memref<4x8x128xf32, #tpu.memory_space<vmem>>, vector<4x8x128xf32>,
    return
  }
  func.func @transform_0(%arg0: i32) -> (i32, i32, i32) {
    %c0_i32 = arith.constant 0 : i32
    %c0_i32_0 = arith.constant 0 : i32
    %c0_i32_1 = arith.constant 0 : i32
    return %arg0, %c0_i32, %c0_i32_0 : i32, i32, i32
  }
  func.func @transform_1(%arg0: i32) -> (i32, i32, i32) {
    %c0_i32 = arith.constant 0 : i32
    %c0_i32_0 = arith.constant 0 : i32
    %c0_i32_1 = arith.constant 0 : i32
    return %arg0, %c0_i32, %c0_i32_0 : i32, i32, i32
  }
  func.func @transform_2(%arg0: i32) -> (i32, i32) {
    %c0_i32 = arith.constant 0 : i32
    %c0_i32_0 = arith.constant 0 : i32
    %c0_i32_1 = arith.constant 0 : i32
    return %c0_i32, %c0_i32_0 : i32, i32
  }
  func.func @transform_3(%arg0: i32) -> (i32, i32, i32) {
    %c0_i32 = arith.constant 0 : i32
    %c0_i32_0 = arith.constant 0 : i32
    %c0_i32_1 = arith.constant 0 : i32
    return %arg0, %c0_i32, %c0_i32_0 : i32, i32, i32
  }
}

</mosaic_0001>

<bundles_post_ra>
// kernel: tpu_custom_call.1
= control target key start
LH: loop header
LB: loop body
LE: loop exit
PB: predicated region body
PF: predicated region fallthrough
CT: control target
= control target key end

     0   :  { %8 = vsyncpa [#allocation3], 0  ;;  %s721_s0 = inlined_call_operand.hbm [shape: f32[16,8,128], index: 0, kind: input, shape index: {}, may-alias: {0,3}]   ;;  %s722_s1 = inlined_call_operand.vmem [shape: f32[16,8,1], index: 1, kind: input, shape index: {}]   ;;  %s723_s2 = inlined_call_operand.vmem [shape: f32[8,128], index: 2, kind: input, shape index: {}]   ;;  %s724_s3 = inlined_call_operand.hbm [shape: f32[16,8,128], index: 3, kind: output, shape index: {}, may-alias: {0,3}]  }
   0x1   :  { %10 = vsyncpa [#allocation3 + $0x1], 0 }
   0x2   :  { %11 = vsyncpa [#allocation4], 0 }
   0x3   :  { %13 = vsyncpa [#allocation4 + $0x1], 0  ;;  %s576_s12 = smov 0   ;;  %s578_s13 = smov 0  }
   0x4   :  { %s580_s14 = smov 0   ;;  %s582_s15 = smov 0  }
   0x5 LB: > { %s597_s16 = sadd.s32 4294967295, %s549_s15   ;;  %s381_s17 = sadd.s32 4294967294, %s549_s15   ;;  %s549_s15 = sphi %s582_s15, %s733_s15   ;;  %s545_s14 = sphi %s580_s14, %s732_s14   ;;  %s541_s13 = sphi %s578_s13, %s731_s13   ;;  %s537_s12 = sphi %s576_s12, %s730_s12  }
   0x6   : > { %s601_s18 = sadd.s32 1, %s549_s15   ;;  %s26_s19 = sadd.s32 1, %s545_s14 }
   0x7   : > { %s23_s20 = ssub.s32 %s549_s15, %s601_s18  ;;  %p33_p0 = scmp.ne.s32.totalorder %s545_s14, %s541_s13 }
   0x8   : > { %p24_p1 = scmp.eq.s32.totalorder %s23_s20, 0  ;;  %p34_p2 = scmp.eq.s32.totalorder %s549_s15, 0 }
   0x9   : > { %p39_p3 = scmp.ne.s32.totalorder %s541_s13, %s537_s12  ;;  %p40_p4 = scmp.eq.s32.totalorder %s597_s16, 0 }
   0xa   : > { %s613_s21 = scalar_select %p24_p1, %s545_s14, %s26_s19  }
   0xb   : > { %p615_p5 = por %p34_p2, %p33_p0  ;;  %p619_p6 = por %p40_p4, %p39_p3 }
   0xc   : > { %p110_p7 = scmp.eq.s32.totalorder %s597_s16, 3  ;;  %p116_p8 = scmp.eq.s32.totalorder %s381_s17, 3 }
   0xd   : > { %p411_p9 = scmp.lt.s32.totalorder %s549_s15, 4  ;;  %s139_s26 = sand.u32 1, %s545_s14  }
   0xe   : > { %p625_p10 = por %p110_p7, %p33_p0  ;;  %p629_p11 = por %p116_p8, %p39_p3 }
   0xf   : > { %s397_s27 = sshll.u32 %s549_s15, 5  ;;  %s384_s28 = sshll.u32 %s139_s26, 5 }
  0x10   : > { %s148_s4 = scalar_lea.hbm %s721_s0, %s397_s27  ;;  %s143_s6 = scalar_lea.vmem [#allocation2], %s384_s28 }
  0x11   : > { %s149_s5 = sshll.u32 %s148_s4, 4  ;;  %s151_s7 = sshll.u32 %s143_s6, 4  ;;  %s150_s5 = int_to_ptr.hbm [resolvable:$true] %s149_s5  ;;  %s152_s7 = int_to_ptr.vmem [resolvable:$true] %s151_s7 }
  0x12   : > { %p640_p12 = pnand %p411_p9, %p615_p5  ;;  %p387_p13 = scmp.ge.s32.totalorder %s549_s15, 1 }
  0x13   : > { %p168_p0 = scmp.lt.s32.totalorder %s549_s15, 5  ;;  %s140_s9 = scalar_lea.sflag [#allocation3], %s139_s26 }
  0x14   : > { %s453_s10 = sshra.s32 %s150_s5, 4  ;;  %p457_p2 = pneg %p640_p12  ;;  %s454_s10 = int_to_ptr.hbm [resolvable:$true] %s453_s10 }
  0x15   : > { %s455_s11 = scalar_lea.hbm %s454_s10, 32  ;;  %s460_s20 = scalar_lea.hbm %s721_s0, 128 }
  0x16   : > { %p456_p1 = scmp.ne.s32.totalorder %s454_s10, %s455_s11  ;;  %p461_p5 = scmp.lt.s32.totalorder %s454_s10, %s721_s0 }
  0x17   : > { %p462_p7 = scmp.lt.s32.totalorder %s460_s20, %s455_s11 }
  0x18   : > { %p458_p3 = pnand %p457_p2, %p456_p1 }
  0x19   : > { %p463_p8 = por %p462_p7, %p461_p5 }
  0x1a   : > { %p459_p4 = pneg %p458_p3 }
  0x1c   : > { %p464_p9 = pnand %p463_p8, %p459_p4 }
  0x1e   : > { %467 = shalt.err (!%p464_p9)
}
  0x1f   : > { %s551_s26 = smov 128   ;;  %s552_s28 = smov 8  }
  0x20   : > { %406 = dma.hbm_to_vmem [thread:$0]  (!%p640_p12), %s150_s5, 512, %s152_s7, %s140_s9, %s551_s26, %s551_s26, %s552_s28  }
  0x21   : > { %p169_p1 = pnand %p387_p13, %p168_p0 }
  0x22   : > { %s661_s29 = sand.u32 (!%p169_p1), 1, %s541_s13  }
  0x23   : > { %172 = sbr.rel (%p169_p1) target bundleno = 186 (0xba), region = 32  ;;  %s388_s30 = sshll.u32 (!%p169_p1), %s661_s29, 5 }
  0x24   : > { %s175_s4 = scalar_lea.sflag (!%p169_p1), [#allocation3], %s661_s29  ;;  %s667_s6 = scalar_lea.vmem (!%p169_p1), [#allocation2], %s388_s30 }
  0x28   : > { %528 = dma.done.wait (%p619_p6), %s175_s4, 512  }
  0x29   : > { %530 = vsyncadd (%p619_p6), %s175_s4, 4294966784  ;;  %s390_s5 = sshll.u32 %s597_s16, 2  ;;  %v553_v0 = vmov 0   ;;  %v223_v10 = vld [vmem:[%s723_s2] sm:$0xff]  ;;  %s206_s17 = scalar_lea.vmem [#allocation5], %s388_s30  ;;  %v216_v19 = vld [vmem:[%s667_s6 + $0x8] sm:$0xff] }
  0x2a   : > { %451 = vset.pattern.permute.xlu1 %v553_v0  ;;  %450 = vset.pattern.permute.xlu0 %v553_v0  ;;  %p209_p12 = scmp.lt.s32.totalorder %s390_s5, 15  ;;  %v215_v13 = vld [vmem:[%s667_s6] sm:$0xff]  ;;  %s398_s19 = sshll.u32 %s597_s16, 5  ;;  %v218_v22 = vld [vmem:[%s667_s6 + $0x18] sm:$0xff]  ;;  %v217_v23 = vld [vmem:[%s667_s6 + $0x10] sm:$0xff] }
  0x2b   : > { %452 = vset.pattern.permute.xlu2 %v553_v0  ;;  %s292_s27 = scalar_lea.hbm %s724_s3, %s398_s19  ;;  %s293_s26 = sshll.u32 %s206_s17, 4  ;;  %s690_s26 = int_to_ptr.vmem [resolvable:$true] %s293_s26 }
  0x2c   : > { %s735_s5 = smov (!%p209_p12, %s390_s5), 15  ;;  %s295_s28 = sshll.u32 %s292_s27, 4  ;;  %s296_s28 = int_to_ptr.hbm [resolvable:$true] %s295_s28 }
  0x2d   : > { %s391_s7 = sshll.u32 %s735_s5, 3  ;;  %s281_s16 = scalar_lea.sflag [#allocation4], %s661_s29 }
  0x2e   : > { %s212_s10 = scalar_lea.vmem %s722_s1, %s391_s7  ;;  %s497_s30 = sshra.s32 %s296_s28, 4  ;;  %s498_s30 = int_to_ptr.hbm [resolvable:$true] %s497_s30 }
  0x2f   : > { %v221_v1 = vld [vmem:[%s212_s10 + $0x10] sm:$0xff]  ;;  %v219_v2 = vld [vmem:[%s212_s10] sm:$0xff]  ;;  %v220_v4 = vld [vmem:[%s212_s10 + $0x8] sm:$0xff]  ;;  %s499_s4 = scalar_lea.hbm %s498_s30, 32  ;;  %s503_s7 = scalar_lea.hbm %s724_s3, 128 }
  0x30   : > { %236 = vperm.xlu1 %451, %v221_v1   ;;  %226 = vperm.xlu0 %450, %v219_v2   ;;  %vm248_vm0 = vcmp.ne.f32.partialorder %v219_v2, 0.0  ;;  %vm249_vm1 = vcmp.ne.f32.partialorder %v220_v4, 0.0  ;;  %v222_v5 = vld [vmem:[%s212_s10 + $0x18] sm:$0xff]  ;;  %vm250_vm2 = vcmp.ne.f32.partialorder %v221_v1, 0.0  ;;  %p500_p6 = scmp.ne.s32.totalorder %s498_s30, %s499_s4  ;;  %p504_p2 = scmp.lt.s32.totalorder %s498_s30, %s724_s3 }
  0x31   : > { %v252_v3 = vsel %vm248_vm0, 1, %v553_v0  ;;  %v253_v6 = vsel %vm249_vm1, 1, %v553_v0  ;;  %vm251_vm3 = vcmp.ne.f32.partialorder %v222_v5, 0.0  ;;  %v254_v8 = vsel %vm250_vm2, 1, %v553_v0  ;;  %p505_p3 = scmp.lt.s32.totalorder %s503_s7, %s499_s4 }
  0x32   : > { %257 = vperm.xlu2 %452, %v252_v3   ;;  %v255_v7 = vsel %vm251_vm3, 1, %v553_v0  ;;  %p501_p13 = pnand %p500_p6, %p625_p10 }
  0x33   : > { %p506_p4 = por %p505_p3, %p504_p2 }
  0x34   : > { %p502_p0 = pneg %p501_p13 }
  0x36   : > { %p507_p5 = pnand %p506_p4, %p502_p0 }
  0x38   : > { %241 = vperm.xlu1 %451, %v222_v5   ;;  %231 = vperm.xlu0 %450, %v220_v4  }
  0x3a   : > { %260 = vperm.xlu2 %452, %v253_v6  }
  0x40   : > { %266 = vperm.xlu1 %451, %v255_v7   ;;  %263 = vperm.xlu0 %450, %v254_v8  }
  0x8c   : > { %v258_v9 = vpop.permute.xlu2 %257 }
  0x8d   : > { %vm268_vm4 = vcmp.eq.s32.totalorder %v258_v9, 1 }
  0x94   : > { %v261_v16 = vpop.permute.xlu2 %260 }
  0x95   : > { %vm269_vm5 = vcmp.eq.s32.totalorder %v261_v16, 1 }
  0xa2   : > { %v237_v11 = vpop.permute.xlu1 %236  ;;  %v227_v12 = vpop.permute.xlu0 %226 }
  0xa3   : > { %v244_v14 = vmul.f32 %v227_v12, %v223_v10  ;;  %v246_v24 = vmul.f32 %v237_v11, %v223_v10 }
  0xa5   : > { %v272_v15 = vsel %vm268_vm4, %v244_v14, %v215_v13 }
  0xa6   : > { %276 = vst [vmem:[%s206_s17] sm:$0xff] %v272_v15 }
  0xaa   : > { %v242_v17 = vpop.permute.xlu1 %241  ;;  %v232_v18 = vpop.permute.xlu0 %231 }
  0xab   : > { %v245_v20 = vmul.f32 %v232_v18, %v223_v10  ;;  %v247_v25 = vmul.f32 %v242_v17, %v223_v10 }
  0xad   : > { %v273_v21 = vsel %vm269_vm5, %v245_v20, %v216_v19 }
  0xae   : > { %277 = vst [vmem:[%s206_s17 + $0x8] sm:$0xff] %v273_v21 }
  0xb2   : > { %v267_v26 = vpop.permute.xlu1 %266  ;;  %v264_v27 = vpop.permute.xlu0 %263 }
  0xb3   : > { %vm271_vm6 = vcmp.eq.s32.totalorder %v267_v26, 1  ;;  %vm270_vm7 = vcmp.eq.s32.totalorder %v264_v27, 1 }
  0xb4   : > { %v275_v28 = vsel %vm271_vm6, %v247_v25, %v218_v22  ;;  %v274_v29 = vsel %vm270_vm7, %v246_v24, %v217_v23 }
  0xb5   : > { %279 = vst [vmem:[%s206_s17 + $0x18] sm:$0xff] %v275_v28 }
  0xb6   : > { %278 = vst [vmem:[%s206_s17 + $0x10] sm:$0xff] %v274_v29 }
  0xb7   : > { %510 = shalt.err (!%p507_p5)
}
  0xb8   : > { %s554_s29 = smov 128   ;;  %s555_s10 = smov 8  }
  0xb9   : > { %401 = dma.vmem_to_hbm [thread:$0]  (%p625_p10), %s690_s26, 512, %s296_s28, %s281_s16, %s554_s29, %s554_s29, %s555_s10  }
  0xba PF: > { %p412_p7 = scmp.ge.s32.totalorder %s549_s15, 2  ;;  %s310_s23 = sand.u32 1, %s537_s12  }
  0xbb   : > { %s311_s11 = scalar_lea.sflag [#allocation4], %s310_s23 }
  0xbc   : > { %p408_p8 = pnand %p412_p7, %p629_p11 }
  0xbe   : > { %p409_p9 = pneg %p408_p8 }
  0xc0   : > { %532 = dma.done.wait (%p409_p9), %s311_s11, 512  }
  0xc1   : > { %534 = vsyncadd (%p409_p9), %s311_s11, 4294966784  ;;  %p16_p1 = scmp.ge.s32.totalorder %s601_s18, 6   ;;  %s730_s12 = smov %s541_s13 }
  0xc2   : > { %s731_s13 = smov %s545_s14  ;;  %s732_s14 = smov %s613_s21 }
  0xc3   : > { %s733_s15 = smov %s601_s18  ;;  %18 = sbr.rel (!%p16_p1) target bundleno = 5 (0x5), region = 80 }
  0xc8   :  { %317 = vsyncpa [#allocation3], 1 }
  0xc9   :  { %319 = vsyncpa [#allocation3 + $0x1], 1 }
  0xca   :  { %320 = vsyncpa [#allocation4], 1 }
  0xcb   :  { %322 = vsyncpa [#allocation4 + $0x1], 1 }

</bundles_post_ra>
